<compile_context>
chip_gen: v7x
topology: tpu7x:2x2x1
jax: 0.10.0
libtpu: 0.0.40
codegen_flags: <defaults>
</compile_context>

<pallas_src>
import functools

import jax
import jax.numpy as jnp
from jax.experimental import pallas as pl
from jax.experimental.pallas import tpu as pltpu


# ----------------------------------------------------------------------------
# Generation-aware VMEM budget.
# ----------------------------------------------------------------------------
@functools.lru_cache(maxsize=None)
def _vmem_limit_bytes():
    cap = 128 * 1024 * 1024
    try:
        info = pltpu.get_tpu_info()
        cap = int(getattr(info, "vmem_capacity_bytes", cap) or cap)
    except Exception:
        pass
    # ~81% of physical, capped at 100 MiB (=> ~52 MiB on v7x, 100 MiB on v5e/v6e)
    return int(min(cap * 13 // 16, 100 * 1024 * 1024))


# ----------------------------------------------------------------------------
# Conv2d (NHWC) Pallas kernel: per-batch grid, kernel taps unrolled into bf16
# MXU matmuls with f32 accumulation, with optional fused bias + residual add +
# ReLU (BN is folded into the weights/bias outside the kernel).
# ----------------------------------------------------------------------------
@functools.lru_cache(maxsize=None)
def _conv2d_call(B, H, W, Cin, Cout, KH, KW, dil, relu, has_res):
    Hp = H + 2 * dil * (KH // 2)
    Wp = W + 2 * dil * (KW // 2)

    def kernel(*refs):
        if has_res:
            x_ref, w_ref, b_ref, r_ref, o_ref = refs
        else:
            x_ref, w_ref, b_ref, o_ref = refs
        acc = jnp.zeros((H * W, Cout), jnp.float32)
        for kh in range(KH):
            for kw in range(KW):
                patch = x_ref[0, kh * dil:kh * dil + H, kw * dil:kw * dil + W, :]
                acc = acc + jnp.dot(patch.reshape(H * W, Cin), w_ref[kh, kw],
                                    preferred_element_type=jnp.float32)
        acc = acc + b_ref[...]
        out = acc.reshape(H, W, Cout)
        if has_res:
            out = out + r_ref[0]
        if relu:
            out = jnp.maximum(out, 0.0)
        o_ref[0] = out.astype(o_ref.dtype)

    in_specs = [
        pl.BlockSpec((1, Hp, Wp, Cin), lambda i: (i, 0, 0, 0)),
        pl.BlockSpec((KH, KW, Cin, Cout), lambda i: (0, 0, 0, 0)),
        pl.BlockSpec((1, Cout), lambda i: (0, 0)),
    ]
    if has_res:
        in_specs.append(pl.BlockSpec((1, H, W, Cout), lambda i: (i, 0, 0, 0)))

    flops = 2 * B * H * W * KH * KW * Cin * Cout
    bytes_accessed = ((B * Hp * Wp * Cin + KH * KW * Cin * Cout) * 2
                      + Cout * 4
                      + B * H * W * Cout * 4 * (2 if has_res else 1))
    return pl.pallas_call(
        kernel,
        out_shape=jax.ShapeDtypeStruct((B, H, W, Cout), jnp.float32),
        grid=(B,),
        in_specs=in_specs,
        out_specs=pl.BlockSpec((1, H, W, Cout), lambda i: (i, 0, 0, 0)),
        compiler_params=pltpu.CompilerParams(
            dimension_semantics=("parallel",),
            vmem_limit_bytes=_vmem_limit_bytes()),
        cost_estimate=pl.CostEstimate(flops=flops, transcendentals=0,
                                      bytes_accessed=bytes_accessed),
    )


def conv2d(x, w, b, *, dilation=1, relu=False, residual=None):
    """x: (B,H,W,Cin), w: (KH,KW,Cin,Cout), b: (Cout,). SAME padding.

    Inputs/weights are cast to bf16 at the pallas_call boundary (MXU bf16);
    bias, residual, ReLU and accumulation stay in f32.
    """
    B, H, W, Cin = x.shape
    KH, KW, _, Cout = w.shape
    ph = dilation * (KH // 2)
    pw = dilation * (KW // 2)
    xp = jnp.pad(x, ((0, 0), (ph, ph), (pw, pw), (0, 0))).astype(jnp.bfloat16)
    call = _conv2d_call(B, H, W, Cin, Cout, KH, KW, dilation, relu,
                        residual is not None)
    args = [xp, w.astype(jnp.bfloat16), b.reshape(1, Cout).astype(jnp.float32)]
    if residual is not None:
        args.append(residual.astype(jnp.float32))
    return call(*args)


def conv1d(x, w, b, *, relu=False, residual=None):
    """x: (B,L,Cin), w: (1,K,Cin,Cout). SAME padding.

    The K taps are folded into a single (B*L, K*Cin) x (K*Cin, Cout) MXU
    contraction (instead of K tiny M=L matmuls); the im2col is a cheap
    plain-JAX concat of shifted slices of the small 1-D trunk.
    """
    B, L, Cin = x.shape
    K, Cout = w.shape[1], w.shape[3]
    pad = K // 2
    xp = jnp.pad(x, ((0, 0), (pad, pad), (0, 0)))
    cols = jnp.concatenate([xp[:, k:k + L, :] for k in range(K)], axis=-1)
    wf = w[0].reshape(K * Cin, Cout)[None, None]            # (1,1,K*Cin,Cout)
    r4 = None if residual is None else residual[None]       # (1,B,L,Cout)
    y = conv2d(cols[None], wf, b, relu=relu, residual=r4)   # (1,B,L,Cout)
    return y[0]


# ----------------------------------------------------------------------------
# OuterConcatenation2D fused with the first ResNet2D conv (+BN+ReLU).
#
# pair[b,i,j] = concat(h[b,i], h[b,j]) followed by a KxK SAME conv factorizes:
#   out[b,i,j] = sum_kw maskJ[j,kw] * Rrow[b,i,kw] + sum_kh maskI[i,kh] * Ccol[b,j,kh]
# where Rrow/Ccol are 1-D convolutions of h against the row/column halves of
# the conv weight and maskJ/maskI encode the zero padding.  The (B,L,L,2*C1)
# pair tensor is never materialized and the O(L^2) conv becomes O(L).
# ----------------------------------------------------------------------------
@functools.lru_cache(maxsize=None)
def _outer_conv_call(B, L, K, Cout):
    P = K // 2

    def kernel(r_ref, c_ref, b_ref, o_ref):
        jj = jax.lax.broadcasted_iota(jnp.int32, (1, L, 1), 1)
        ii = jax.lax.broadcasted_iota(jnp.int32, (L, 1, 1), 0)
        acc = jnp.zeros((L, L, Cout), jnp.float32)
        for t in range(K):
            off = t - P
            rt = r_ref[0, t]                  # (L, Cout): row-half contribution
            ct = c_ref[0, t]                  # (L, Cout): col-half contribution
            if off == 0:
                acc = acc + rt[:, None, :] + ct[None, :, :]
            else:
                mj = ((jj + off >= 0) & (jj + off < L)).astype(jnp.float32)
                mi = ((ii + off >= 0) & (ii + off < L)).astype(jnp.float32)
                acc = acc + rt[:, None, :] * mj + ct[None, :, :] * mi
        acc = acc + b_ref[...].reshape(1, 1, Cout)
        o_ref[0] = jnp.maximum(acc, 0.0).astype(o_ref.dtype)

    return pl.pallas_call(
        kernel,
        out_shape=jax.ShapeDtypeStruct((B, L, L, Cout), jnp.float32),
        grid=(B,),
        in_specs=[
            pl.BlockSpec((1, K, L, Cout), lambda i: (i, 0, 0, 0)),
            pl.BlockSpec((1, K, L, Cout), lambda i: (i, 0, 0, 0)),
            pl.BlockSpec((1, Cout), lambda i: (0, 0)),
        ],
        out_specs=pl.BlockSpec((1, L, L, Cout), lambda i: (i, 0, 0, 0)),
        compiler_params=pltpu.CompilerParams(
            dimension_semantics=("parallel",),
            vmem_limit_bytes=_vmem_limit_bytes()),
    )


def outer_concat_conv(h, w, b):
    """h: (B,L,C1), w: (K,K,2*C1,Cout), b: (Cout,). Returns (B,L,L,Cout)."""
    B, L, C1 = h.shape
    K = w.shape[0]
    Cout = w.shape[3]
    wr = w[:, :, :C1, :]                       # applies to h[b, i]
    wc = w[:, :, C1:, :]                       # applies to h[b, j]
    # Rrow[b,i,kw,co] = sum_kh hpad[b,i+kh,:] . wr[kh,kw,:,co]  (conv over kh)
    wr_c = jnp.transpose(wr, (0, 2, 1, 3)).reshape(K, C1, K * Cout)[None]
    # Ccol[b,j,kh,co] = sum_kw hpad[b,j+kw,:] . wc[kh,kw,:,co]  (conv over kw)
    wc_c = jnp.transpose(wc, (1, 2, 0, 3)).reshape(K, C1, K * Cout)[None]
    zeros = jnp.zeros((K * Cout,), jnp.float32)
    rrow = conv1d(h, wr_c, zeros).reshape(B, L, K, Cout).transpose(0, 2, 1, 3)
    ccol = conv1d(h, wc_c, zeros).reshape(B, L, K, Cout).transpose(0, 2, 1, 3)
    return _outer_conv_call(B, L, K, Cout)(rrow, ccol, b.reshape(1, Cout))


# ----------------------------------------------------------------------------
# Criss-cross attention (CCNet), all six heads in ONE kernel over a (B, 6)
# grid.  Row and column branches are computed in a single pass; the spatially
# transposed q/k/v views are prepared once at the wrapper (small tensors), and
# the column-branch result is returned in the transposed frame (no in-kernel
# 3-D transpose, no HBM round trip of the L^3 attention maps).
# ----------------------------------------------------------------------------
@functools.lru_cache(maxsize=None)
def _cca_call(B, NH, L, C, Cq):
    def kernel(x_ref, q_ref, k_ref, qt_ref, kt_ref, v_ref, vt_ref,
               o1_ref, o2_ref):
        x = x_ref[0, 0]
        q = q_ref[0, 0]
        k = k_ref[0, 0]
        qt = qt_ref[0, 0]
        kt = kt_ref[0, 0]
        v = v_ref[0, 0]
        vt = vt_ref[0, 0]
        # row ("W") energies: e_w[i, j, w] = <q[i,j,:], k[i,w,:]>
        e_w = jnp.einsum('rjc,rwc->rjw', q, k,
                         preferred_element_type=jnp.float32)       # (L, L, L)
        # column ("H") energies in the transposed frame:
        # e_ht[j, i, h] = <q[i,j,:], k[h,j,:]>, diagonal (h == i) masked to -inf
        e_ht = jnp.einsum('rjc,rwc->rjw', qt, kt,
                          preferred_element_type=jnp.float32)      # (L, L, L)
        mid = jax.lax.broadcasted_iota(jnp.int32, (L, L, L), 1)
        last = jax.lax.broadcasted_iota(jnp.int32, (L, L, L), 2)
        e_ht = jnp.where(mid == last, jnp.float32(-1e30), e_ht)
        # joint softmax over the concatenated (row + column) entries per pixel
        m = jnp.maximum(jnp.max(e_w, axis=-1), jnp.max(e_ht, axis=-1).T)
        m_t = m.T
        p_w = jnp.exp(e_w - m[:, :, None])
        p_ht = jnp.exp(e_ht - m_t[:, :, None])
        s = jnp.sum(p_w, axis=-1) + jnp.sum(p_ht, axis=-1).T        # (L, L)
        inv = pl.reciprocal(s, approx=True)       # EUP, not VALU divides
        inv_t = inv.T
        # unnormalized aggregation; 1/s applied afterwards (O(L^2*C) not O(L^3))
        out_w = jnp.einsum('rjw,rwc->rjc', p_w.astype(v.dtype), v,
                           preferred_element_type=jnp.float32)      # (L, L, C)
        out_h = jnp.einsum('rjw,rwc->rjc', p_ht.astype(vt.dtype), vt,
                           preferred_element_type=jnp.float32)      # (L, L, C)
        # gamma is folded into v at the wrapper (linear in v)
        o1_ref[0, 0] = (x + out_w * inv[:, :, None]).astype(o1_ref.dtype)
        o2_ref[0, 0] = (out_h * inv_t[:, :, None]).astype(o2_ref.dtype)

    spec_c = pl.BlockSpec((1, 1, L, L, C), lambda b, h: (b, h, 0, 0, 0))
    spec_q = pl.BlockSpec((1, 1, L, L, Cq), lambda b, h: (b, h, 0, 0, 0))
    flops = B * NH * (4 * L * L * L * Cq + 4 * L * L * L * C)
    return pl.pallas_call(
        kernel,
        out_shape=(jax.ShapeDtypeStruct((B, NH, L, L, C), jnp.float32),
                   jax.ShapeDtypeStruct((B, NH, L, L, C), jnp.float32)),
        grid=(B, NH),
        in_specs=[spec_c, spec_q, spec_q, spec_q, spec_q, spec_c, spec_c],
        out_specs=(spec_c, spec_c),
        compiler_params=pltpu.CompilerParams(
            dimension_semantics=("parallel", "parallel"),
            vmem_limit_bytes=_vmem_limit_bytes()),
        cost_estimate=pl.CostEstimate(
            flops=flops,
            transcendentals=2 * B * NH * L * L * L,
            bytes_accessed=9 * B * NH * L * L * C * 4),
    )


def stacked_heads_forward(z, hp):
    """All six output heads (conv 64->bins + RCCA) in one lane-dense pass.

    Returns (B, 6, L, L, num_bins) = head outputs AFTER the gamma-gated
    criss-cross attention (the forward path uses output [0] of each head).
    """
    B, L, _, _ = z.shape
    nb = hp['num_bins']
    cq = hp['cq']
    nh = 6
    y_all = conv2d(z, hp['conv_w'], hp['conv_b'])              # (B,L,L,Cpad) 256-lane dense
    qkv = conv2d(y_all, hp['qkv_w'], hp['qkv_b'])              # fused q/k/v 1x1 conv
    ncq = nh * cq
    q_all = qkv[..., :ncq]
    k_all = qkv[..., ncq:2 * ncq]
    v_all = qkv[..., 2 * ncq:2 * ncq + nh * nb]
    x_all = y_all[..., :nh * nb]

    def split_heads(t, c):
        return jnp.transpose(t.reshape(B, L, L, nh, c), (0, 3, 1, 2, 4))

    tsp = lambda t: jnp.transpose(t, (0, 1, 3, 2, 4))          # swap spatial dims
    x_h = split_heads(x_all, nb)                               # f32
    q_h = split_heads(q_all, cq)                               # f32 (tiny Cq)
    k_h = split_heads(k_all, cq)
    # gamma gate folded linearly into the value tensor
    v_h = split_heads(v_all, nb) * hp['gamma'].reshape(1, nh, 1, 1, 1)
    o1, o2 = _cca_call(B, nh, L, nb, cq)(
        x_h, q_h, k_h, tsp(q_h), tsp(k_h),
        v_h.astype(jnp.bfloat16), tsp(v_h).astype(jnp.bfloat16))
    return o1 + tsp(o2)


# ----------------------------------------------------------------------------
# Deterministic parameter construction (BatchNorm folded in eval mode).
# ----------------------------------------------------------------------------
def make_params(key, *, in_planes, planes1d, k1d, num_blocks1d,
                planes2d, k2d, num_blocks2d, num_out_bins, prott5):
    keys = iter(jax.random.split(key, 512))

    def nrm(shape, scale):
        return scale * jax.random.normal(next(keys), shape, dtype=jnp.float32)

    def conv_bn(kh, kw, cin, cout):
        # Conv (bias=False) followed by eval-mode BatchNorm, folded together.
        w = nrm((kh, kw, cin, cout), 1.0 / jnp.sqrt(kh * kw * cin))
        gamma = 1.0 + nrm((cout,), 0.05)
        beta = nrm((cout,), 0.05)
        mean = nrm((cout,), 0.05)
        var = jnp.ones((cout,), jnp.float32)
        scale = gamma / jnp.sqrt(var + 1e-5)
        return w * scale, beta - mean * scale

    def conv_bias(kh, kw, cin, cout):
        w = nrm((kh, kw, cin, cout), 1.0 / jnp.sqrt(kh * kw * cin))
        b = nrm((cout,), 0.02)
        return w, b

    p = {}
    # ResNet1D
    p['r1_conv1'] = conv_bn(1, k1d, in_planes, planes1d)
    p['r1_blocks'] = [(conv_bn(1, k1d, planes1d, planes1d),
                       conv_bn(1, k1d, planes1d, planes1d))
                      for _ in range(num_blocks1d)]
    # ResNet2D
    in2d = 2 * (planes1d + prott5)
    p['r2_conv1'] = conv_bn(k2d, k2d, in2d, planes2d)
    p['r2_blocks'] = [(conv_bn(k2d, k2d, planes2d, planes2d),
                       conv_bn(k2d, k2d, planes2d, planes2d))
                      for _ in range(num_blocks2d)]

    # Output heads: 6 x (Conv2d(planes2d->bins, k) + RCCA) stacked into one
    # lane-dense parameter set (head conv Cout padded to a multiple of 128,
    # q/k/v packed block-diagonally into a single fused 1x1 conv).
    nb = num_out_bins
    cq = max(1, nb // 8)
    nh = 6
    cpad = ((nh * nb + 127) // 128) * 128              # 222 -> 256 lanes
    nqkv = 2 * nh * cq + nh * nb
    conv_w = jnp.zeros((k2d, k2d, planes2d, cpad), jnp.float32)
    conv_b = jnp.zeros((cpad,), jnp.float32)
    qkv_w = jnp.zeros((cpad, nqkv), jnp.float32)
    qkv_b = jnp.zeros((nqkv,), jnp.float32)
    gammas = []
    for h in range(nh):
        cw, cb = conv_bias(k2d, k2d, planes2d, nb)
        qw, qb = conv_bias(1, 1, nb, cq)
        kw_, kb = conv_bias(1, 1, nb, cq)
        vw, vb = conv_bias(1, 1, nb, nb)
        conv_w = conv_w.at[..., h * nb:(h + 1) * nb].set(cw)
        conv_b = conv_b.at[h * nb:(h + 1) * nb].set(cb)
        rows = slice(h * nb, (h + 1) * nb)
        qkv_w = qkv_w.at[rows, h * cq:(h + 1) * cq].set(qw[0, 0])
        qkv_w = qkv_w.at[rows, nh * cq + h * cq:nh * cq + (h + 1) * cq].set(kw_[0, 0])
        qkv_w = qkv_w.at[rows, 2 * nh * cq + h * nb:2 * nh * cq + (h + 1) * nb].set(vw[0, 0])
        qkv_b = qkv_b.at[h * cq:(h + 1) * cq].set(qb)
        qkv_b = qkv_b.at[nh * cq + h * cq:nh * cq + (h + 1) * cq].set(kb)
        qkv_b = qkv_b.at[2 * nh * cq + h * nb:2 * nh * cq + (h + 1) * nb].set(vb)
        # TODO(synk): torch initializes the criss-cross gamma gate to 0 (attn is
        # a no-op at init); a nonzero value is used so the path is exercised.
        gammas.append(0.5 + 0.05 * h)
    p['heads'] = {
        'num_bins': nb, 'cq': cq,
        'conv_w': conv_w, 'conv_b': conv_b,
        'qkv_w': qkv_w[None, None], 'qkv_b': qkv_b,
        'gamma': jnp.asarray(gammas, jnp.float32),
    }
    return p


# ----------------------------------------------------------------------------
# Forward pass.
# ----------------------------------------------------------------------------
def abresnet_forward(p, x1, x2, *, dilation_cycle=2):
    """x1: (B, in_planes, L) one-hot, x2: (B, 1024, L) ProtT5 (torch NCL)."""
    # ResNet1D
    h = jnp.transpose(x1, (0, 2, 1)).astype(jnp.float32)     # (B, L, Cin)
    w, b = p['r1_conv1']
    h = conv1d(h, w, b, relu=True)
    for (w1, b1), (w2, b2) in p['r1_blocks']:
        t = conv1d(h, w1, b1, relu=True)
        h = conv1d(t, w2, b2, relu=True, residual=h)

    # concat ProtT5 features along channels
    x2c = jnp.transpose(x2, (0, 2, 1)).astype(jnp.float32)
    h = jnp.concatenate([h, x2c], axis=-1)                    # (B, L, 32+1024)

    # OuterConcatenation2D fused into the first ResNet2D conv (+BN+ReLU):
    # the (B, L, L, 2112) pair tensor is never materialized in HBM.
    w, b = p['r2_conv1']
    z = outer_concat_conv(h, w, b)                            # (B, L, L, 64)

    # ResNet2D dilated residual blocks; torch.utils.checkpoint is a no-op for
    # forward semantics.
    for i, ((w1, b1), (w2, b2)) in enumerate(p['r2_blocks']):
        dil = 2 ** (i % dilation_cycle)
        t = conv2d(z, w1, b1, dilation=dil, relu=True)
        z = conv2d(t, w2, b2, dilation=dil, relu=True, residual=z)

    # TODO(synk): nn.Dropout2d treated as inference-mode identity (no RNG).

    # Six stacked output heads; forward path uses output [0] of each head.
    out_h = stacked_heads_forward(z, p['heads'])              # (B, 6, L, L, 37)

    names = ('ca_dist', 'cb_dist', 'no_dist', 'omega', 'theta', 'phi')
    outs = {n: out_h[:, i] for i, n in enumerate(names)}

    sym = lambda t: t + jnp.transpose(t, (0, 2, 1, 3))        # == transpose(2,3) in NCHW
    outs['ca_dist'] = sym(outs['ca_dist'])
    outs['cb_dist'] = sym(outs['cb_dist'])
    outs['omega'] = sym(outs['omega'])

    to_nchw = lambda t: jnp.transpose(t, (0, 3, 1, 2))
    return [to_nchw(outs[n]) for n in names]


if __name__ == "__main__":
    key = jax.random.PRNGKey(0)
    kp, kx1, kx2 = jax.random.split(key, 3)

    B, L = 2, 16
    in_planes = 21            # one-hot residue encoding size
    num_out_bins = 37
    dilation_cycle = 2        # (torch default 5; reduced # blocks kept consistent)

    params = make_params(kp, in_planes=in_planes, planes1d=32, k1d=17,
                         num_blocks1d=2, planes2d=64, k2d=5, num_blocks2d=3,
                         num_out_bins=num_out_bins, prott5=1024)

    # x1: one-hot sequence (torch NCL layout); x2: ProtT5 embeddings (NCL)
    idx = jax.random.randint(kx1, (B, L), 0, in_planes)
    x1 = jnp.transpose(jax.nn.one_hot(idx, in_planes, dtype=jnp.float32),
                       (0, 2, 1))                             # (B, 21, L)
    x2 = 0.1 * jax.random.normal(kx2, (B, 1024, L), jnp.float32)

    outs = abresnet_forward(params, x1, x2, dilation_cycle=dilation_cycle)
    outs = jax.block_until_ready(outs)

    assert [tuple(o.shape) for o in outs] == [(B, num_out_bins, L, L)] * 6
    assert all(bool(jnp.all(jnp.isfinite(o))) for o in outs)
    print("KERNEL_OK")
</pallas_src>

<mosaic_0001>
module attributes {stable_mosaic.version = 11 : i64} {
  func.func @kernel(%arg0: i32, %arg1: memref<1x2x16x357xbf16, #tpu.memory_space<vmem>>, %arg2: memref<1x1x357x32xbf16, #tpu.memory_space<vmem>>, %arg3: memref<1x32xf32, #tpu.memory_space<vmem>>, %arg4: memref<1x2x16x32xf32, #tpu.memory_space<vmem>>) attributes {dimension_semantics = [#tpu.dimension_semantics<parallel>], iteration_bounds = array<i64: 1>, scalar_prefetch = 0 : i64, scratch_operands = 0 : i64, tpu.core_type = #tpu.core_type<tc>, window_params = [{transform_indices = @transform_0, window_bounds = array<i64: 1, 2, 16, 357>}, {pipeline_mode = #tpu.pipeline_mode<synchronous>, transform_indices = @transform_1, window_bounds = array<i64: 1, 1, 357, 32>}, {pipeline_mode = #tpu.pipeline_mode<synchronous>, transform_indices = @transform_2, window_bounds = array<i64: 1, 32>}, {transform_indices = @transform_3, window_bounds = array<i64: 1, 2, 16, 32>}]} {
    %cst = arith.constant 0.000000e+00 : f32
    %0 = vector.broadcast %cst : f32 to vector<32x32xf32>
    %c0 = arith.constant 0 : index
    %c0_0 = arith.constant 0 : index
    %c0_1 = arith.constant 0 : index
    %c0_2 = arith.constant 0 : index
    %1 = vector.load %arg1[%c0, %c0_0, %c0_1, %c0_2] : memref<1x2x16x357xbf16, #tpu.memory_space<vmem>>, vector<1x2x16x357xbf16>
    %2 = vector.shape_cast %1 : vector<1x2x16x357xbf16> to vector<2x16x357xbf16>
    %3 = vector.shape_cast %2 : vector<2x16x357xbf16> to vector<32x357xbf16>
    %c0_3 = arith.constant 0 : index
    %c0_4 = arith.constant 0 : index
    %c0_5 = arith.constant 0 : index
    %c0_6 = arith.constant 0 : index
    %4 = vector.load %arg2[%c0_3, %c0_4, %c0_5, %c0_6] : memref<1x1x357x32xbf16, #tpu.memory_space<vmem>>, vector<1x1x357x32xbf16>
    %5 = vector.shape_cast %4 : vector<1x1x357x32xbf16> to vector<357x32xbf16>
    %cst_7 = arith.constant dense<0.000000e+00> : vector<32x32xf32>
    %6 = tpu.matmul %3, %5, %cst_7 {dimension_numbers = #tpu.dot_dimension_numbers<[1], [0], [0], [1], [0, 0, 1, 1], [], []>} : vector<32x357xbf16>, vector<357x32xbf16>, vector<32x32xf32> -> vector<32x32xf32>
    %7 = arith.addf %0, %6 : vector<32x32xf32>
    %c0_8 = arith.constant 0 : index
    %c0_9 = arith.constant 0 : index
    %8 = vector.load %arg3[%c0_8, %c0_9] : memref<1x32xf32, #tpu.memory_space<vmem>>, vector<1x32xf32>
    %9 = vector.broadcast %8 : vector<1x32xf32> to vector<32x32xf32>
    %10 = arith.addf %7, %9 : vector<32x32xf32>
    %11 = vector.shape_cast %10 : vector<32x32xf32> to vector<2x16x32xf32>
    %cst_10 = arith.constant 0.000000e+00 : f32
    %12 = vector.broadcast %cst_10 : f32 to vector<2x16x32xf32>
    %13 = arith.maximumf %11, %12 : vector<2x16x32xf32>
    %c0_11 = arith.constant 0 : index
    %c0_12 = arith.constant 0 : index
    %c0_13 = arith.constant 0 : index
    %c0_14 = arith.constant 0 : index
    %14 = vector.load %arg4[%c0_11, %c0_12, %c0_13, %c0_14] : memref<1x2x16x32xf32, #tpu.memory_space<vmem>>, vector<1x2x16x32xf32>
    %15 = vector.shape_cast %14 : vector<1x2x16x32xf32> to vector<2x16x32xf32>
    %16 = vector.shape_cast %13 : vector<2x16x32xf32> to vector<1x2x16x32xf32>
    tpu.vector_store %arg4[%c0_11, %c0_12, %c0_13, %c0_14], %16 {strides = array<i32>} : memref<1x2x16x32xf32, #tpu.memory_space<vmem>>, vector<1x2x16x32xf32>,
    return
  }
  func.func @transform_0(%arg0: i32) -> (i32, i32, i32, i32) {
    %c0_i32 = arith.constant 0 : i32
    %c0_i32_0 = arith.constant 0 : i32
    %c0_i32_1 = arith.constant 0 : i32
    %c0_i32_2 = arith.constant 0 : i32
    return %arg0, %c0_i32, %c0_i32_0, %c0_i32_1 : i32, i32, i32, i32
  }
  func.func @transform_1(%arg0: i32) -> (i32, i32, i32, i32) {
    %c0_i32 = arith.constant 0 : i32
    %c0_i32_0 = arith.constant 0 : i32
    %c0_i32_1 = arith.constant 0 : i32
    %c0_i32_2 = arith.constant 0 : i32
    %c0_i32_3 = arith.constant 0 : i32
    return %c0_i32, %c0_i32_0, %c0_i32_1, %c0_i32_2 : i32, i32, i32, i32
  }
  func.func @transform_2(%arg0: i32) -> (i32, i32) {
    %c0_i32 = arith.constant 0 : i32
    %c0_i32_0 = arith.constant 0 : i32
    %c0_i32_1 = arith.constant 0 : i32
    return %c0_i32, %c0_i32_0 : i32, i32
  }
  func.func @transform_3(%arg0: i32) -> (i32, i32, i32, i32) {
    %c0_i32 = arith.constant 0 : i32
    %c0_i32_0 = arith.constant 0 : i32
    %c0_i32_1 = arith.constant 0 : i32
    %c0_i32_2 = arith.constant 0 : i32
    return %arg0, %c0_i32, %c0_i32_0, %c0_i32_1 : i32, i32, i32, i32
  }
}

</mosaic_0001>

<bundles_post_ra>
// kernel: tpu_custom_call.1
= control target key start
LH: loop header
LB: loop body
LE: loop exit
PB: predicated region body
PF: predicated region fallthrough
CT: control target
= control target key end

     0   :  { %8 = vsyncpa [#allocation3], 0  ;;  %s727_s0 = inlined_call_operand.hbm [shape: bf16[1,2,16,357], index: 0, kind: input, shape index: {}]   ;;  %s728_s1 = inlined_call_operand.hbm [shape: bf16[1,1,357,32], index: 1, kind: input, shape index: {}]   ;;  %s729_s2 = inlined_call_operand.hbm [shape: f32[1,32], index: 2, kind: input, shape index: {}]   ;;  %s730_s3 = inlined_call_operand.hbm [shape: f32[1,2,16,32], index: 3, kind: output, shape index: {}]  }
   0x1   :  { %9 = vsyncpa [#allocation6], 0 }
   0x2   :  { %10 = vsyncpa [#allocation4], 0  ;;  %s642_s12 = smov [#allocation5]   ;;  %s548_s16 = scalar_lea.hbm %s728_s1, 2880 }
   0x3   :  { %s28_s13 = sshll.u32 %s642_s12, 4  ;;  %p549_p0 = scmp.ne.s32.totalorder %s728_s1, %s548_s16  ;;  %s29_s13 = int_to_ptr.vmem [resolvable:$true] %s28_s13 }
   0x4   :  { %p552_p1 = scmp.lt.u32.totalorder %s548_s16, %s728_s1 }
   0x6   :  { %p554_p2 = pnand %p552_p1, %p549_p0 }
   0x8   :  { %557 = shalt.err (!%p554_p2)
}
   0x9   :  { %s558_s21 = scalar_lea.vmem %s29_s13, 2880  ;;  %p563_p4 = scmp.lt.s32.totalorder %s29_s13, %s29_s13 }
   0xa   :  { %p559_p3 = scmp.ne.s32.totalorder %s29_s13, %s558_s21  ;;  %p564_p5 = scmp.lt.s32.totalorder %s558_s21, %s558_s21 }
   0xc   :  { %p565_p6 = por %p564_p5, %p563_p4 }
   0xe   :  { %p566_p7 = pnand %p565_p6, %p559_p3 }
  0x10   :  { %569 = shalt.err (!%p566_p7)
}
  0x11   :  { %s643_s22 = smov 64   ;;  %s644_s23 = smov 4  }
  0x12   :  { %34 = dma.hbm_to_vmem [thread:$0]  %s728_s1, 2880, %s29_s13, [#allocation6], %s643_s22, %s643_s22, %s644_s23  }
  0x13   :  { %s645_s26 = smov [#allocation2]   ;;  %s570_s30 = scalar_lea.hbm %s727_s0, 768 }
  0x14   :  { %s16_s27 = sshll.u32 %s645_s26, 4  ;;  %p571_p8 = scmp.ne.s32.totalorder %s727_s0, %s570_s30  ;;  %s17_s27 = int_to_ptr.vmem [resolvable:$true] %s16_s27 }
  0x15   :  { %p574_p9 = scmp.lt.u32.totalorder %s570_s30, %s727_s0 }
  0x17   :  { %p576_p10 = pnand %p574_p9, %p571_p8 }
  0x19   :  { %579 = shalt.err (!%p576_p10)
}
  0x1a   :  { %s580_s8 = scalar_lea.vmem %s17_s27, 768  ;;  %p585_p12 = scmp.lt.s32.totalorder %s17_s27, %s17_s27 }
  0x1b   :  { %p581_p11 = scmp.ne.s32.totalorder %s17_s27, %s580_s8  ;;  %p586_p13 = scmp.lt.s32.totalorder %s580_s8, %s580_s8 }
  0x1d   :  { %p587_p0 = por %p586_p13, %p585_p12 }
  0x1f   :  { %p588_p1 = pnand %p587_p0, %p581_p11 }
  0x21   :  { %591 = shalt.err (!%p588_p1)
}
  0x22   :  { %s646_s1 = smov 192   ;;  %s647_s9 = smov 12  }
  0x23   :  { %22 = dma.hbm_to_vmem [thread:$0]  %s727_s0, 768, %s17_s27, [#allocation3], %s646_s1, %s646_s1, %s647_s9  }
  0x24   :  { %s648_s12 = smov [#allocation7]   ;;  %s592_s16 = scalar_lea.hbm %s729_s2, 16 }
  0x25   :  { %s41_s13 = sshll.u32 %s648_s12, 4  ;;  %p593_p2 = scmp.ne.s32.totalorder %s729_s2, %s592_s16  ;;  %s42_s13 = int_to_ptr.vmem [resolvable:$true] %s41_s13 }
  0x26   :  { %p596_p3 = scmp.lt.u32.totalorder %s592_s16, %s729_s2 }
  0x28   :  { %p598_p4 = pnand %p596_p3, %p593_p2 }
  0x2a   :  { %601 = shalt.err (!%p598_p4)
}
  0x2b   :  { %s602_s21 = scalar_lea.vmem %s42_s13, 16  ;;  %s606_s0 = scalar_lea.vmem %s42_s13, 32 }
  0x2c   :  { %p603_p5 = scmp.ne.s32.totalorder %s42_s13, %s602_s21  ;;  %p607_p6 = scmp.lt.s32.totalorder %s42_s13, %s42_s13 }
  0x2d   :  { %p608_p7 = scmp.lt.s32.totalorder %s606_s0, %s602_s21 }
  0x2f   :  { %p609_p8 = por %p608_p7, %p607_p6 }
  0x31   :  { %p610_p9 = pnand %p609_p8, %p603_p5 }
  0x33   :  { %613 = shalt.err (!%p610_p9)
}
  0x34   :  { %44 = dma.hbm_to_vmem [thread:$0]  %s729_s2, 16, %s42_s13, [#allocation6]  }
  0x35   :  { %636 = dma.done.wait [#allocation3], 768  }
  0x36   :  { %637 = vsyncadd [#allocation3], 4294966528 }
  0x37   :  { %638 = dma.done.wait [#allocation6], 2896  }
  0x38   :  { %639 = vsyncadd [#allocation6], 4294964400  ;;  %v517_v0 = vld [vmem:[#allocation5 + $0x40] sm:$0xff]   ;;  %v519_v2 = vld [vmem:[#allocation5 + $0x48] sm:$0xff]   ;;  %vm287_vm0 = vcmask 1041408   ;;  %vm288_vm1 = vcmask 1042432  }
  0x39   :  { %v518_v1 = vld [vmem:[#allocation5] sm:$0xff]   ;;  %451 = vmatprep.subr.bf16.mxu0 %v517_v0  ;;  %v520_v3 = vld [vmem:[#allocation5 + $0x8] sm:$0xff]   ;;  %v521_v4 = vld [vmem:[#allocation5 + $0x50] sm:$0xff]   ;;  %v649_v17 = vmov 65535   ;;  %vm280_vm2 = vcmask 826368   ;;  %vm396_vm3 = vcmask 261120  }
  0x3a   :  { %452 = vmatpush3.bf16.msra.mxu0 %v518_v1  ;;  %v522_v5 = vld [vmem:[#allocation5 + $0x80] sm:$0xff]   ;;  %v523_v6 = vld [vmem:[#allocation5 + $0x10] sm:$0xff]   ;;  %v524_v7 = vld [vmem:[#allocation5 + $0x58] sm:$0xff]   ;;  %v289_v18 = vsel %vm287_vm0, 4294967295, %v649_v17  ;;  %s650_s2 = smov [#allocation8]  }
  0x3b   :  { %453 = vmatprep.subr.bf16.mxu0 %v519_v2  ;;  %488 = vmatprep.subr.bf16.mxu1 %v522_v5  ;;  %v525_v8 = vld [vmem:[#allocation5 + $0x88] sm:$0xff]   ;;  %v526_v9 = vld [vmem:[#allocation5 + $0x18] sm:$0xff]   ;;  %v528_v10 = vld [vmem:[#allocation5 + $0x90] sm:$0xff]   ;;  %v290_v23 = vsel %vm288_vm1, %v289_v18, 0  ;;  %s406_s24 = sshll.u32 %s650_s2, 4  ;;  %s407_s24 = int_to_ptr.vmem [resolvable:$true] %s406_s24 }
  0x3c   :  { %489 = vmatpush3.bf16.msra.mxu1 %v522_v5  ;;  %v527_v11 = vld [vmem:[#allocation5 + $0x60] sm:$0xff]   ;;  %v531_v12 = vld [vmem:[#allocation5 + $0x98] sm:$0xff]   ;;  %v530_v14 = vld [vmem:[#allocation5 + $0x68] sm:$0xff]   ;;  %s614_s25 = scalar_lea.vmem %s407_s24, 512  ;;  %p619_p11 = scmp.lt.s32.totalorder %s407_s24, %s407_s24 }
  0x3d   :  { %490 = vmatprep.subr.bf16.mxu1 %v525_v8  ;;  %v529_v13 = vld [vmem:[#allocation5 + $0x20] sm:$0xff]   ;;  %v532_v16 = vld [vmem:[#allocation5 + $0x28] sm:$0xff]   ;;  %v533_v19 = vld [vmem:[#allocation5 + $0x70] sm:$0xff]   ;;  %p615_p10 = scmp.ne.s32.totalorder %s407_s24, %s614_s25  ;;  %p620_p12 = scmp.lt.s32.totalorder %s614_s25, %s614_s25 }
  0x3e   :  { %454 = vmatpush3.bf16.msra.mxu0 %v520_v3  ;;  %v534_v15 = vld [vmem:[#allocation5 + $0xa0] sm:$0xff]   ;;  %v535_v20 = vld [vmem:[#allocation5 + $0x30] sm:$0xff]   ;;  %v537_v21 = vld [vmem:[#allocation5 + $0xa8] sm:$0xff]  }
  0x3f   :  { %455 = vmatprep.subr.bf16.mxu0 %v521_v4  ;;  %v536_v22 = vld [vmem:[#allocation5 + $0x78] sm:$0xff]   ;;  %v541_v24 = vld [vmem:[#allocation2 + $0x4] ss:$12 sps:$4 sm:$0xff]   ;;  %v542_v25 = vld [vmem:[#allocation5 + $0xb0] ss:$0 sps:$4 sm:$0x77]   ;;  %p621_p13 = por %p620_p12, %p619_p11 }
  0x40   :  { %491 = vmatpush3.bf16.msra.mxu1 %v525_v8  ;;  %326 = vmatprep.mubr.bf16.mxu0 %v541_v24  ;;  %v543_v26 = vld [vmem:[#allocation2 + $0x8] ss:$12 sps:$4 sm:$0xff]   ;;  %v292_v27 = vand.u32 %v542_v25, %v290_v23  ;;  %v539_v29 = vld [vmem:[#allocation2] ss:$12 sps:$4 sm:$0xff]   ;;  %v547_v32 = vld [vmem:[#allocation2 + $0x18] ss:$12 sps:$4 sm:$0xff]  }
  0x41   :  { %492 = vmatprep.subr.bf16.mxu1 %v528_v10  ;;  %v538_v28 = vld [vmem:[#allocation5 + $0x38] sm:$0xff]   ;;  %502 = vmatprep.mubr.msk.bf16.mxu1 %vm280_vm2, %v543_v26  ;;  %v419_v36 = vld [vmem:[#allocation7] ss:$0 sm:$0xff]  ;;  %p622_p0 = pnand %p621_p13, %p615_p10 }
  0x42   :  { %456 = vmatpush3.bf16.msra.mxu0 %v523_v6  ;;  %v544_v30 = vld [vmem:[#allocation2 + $0x20] ss:$12 sps:$4 sm:$0xff]   ;;  %v545_v31 = vld [vmem:[#allocation2 + $0x1c] ss:$12 sps:$4 sm:$0xff]  }
  0x43   :  { %457 = vmatprep.subr.bf16.mxu0 %v524_v7 }
  0x44   :  { %493 = vmatpush3.bf16.msra.mxu1 %v528_v10 }
  0x45   :  { %494 = vmatprep.subr.bf16.mxu1 %v531_v12 }
  0x46   :  { %458 = vmatpush3.bf16.msra.mxu0 %v526_v9 }
  0x47   :  { %459 = vmatprep.subr.bf16.mxu0 %v527_v11 }
  0x48   :  { %495 = vmatpush3.bf16.msra.mxu1 %v531_v12 }
  0x49   :  { %496 = vmatprep.subr.bf16.mxu1 %v534_v15 }
  0x4a   :  { %460 = vmatpush3.bf16.msra.mxu0 %v529_v13 }
  0x4b   :  { %461 = vmatprep.subr.bf16.mxu0 %v530_v14 }
  0x4c   :  { %497 = vmatpush3.bf16.msra.mxu1 %v534_v15 }
  0x4d   :  { %498 = vmatprep.subr.bf16.mxu1 %v537_v21 }
  0x4e   :  { %462 = vmatpush3.bf16.msra.mxu0 %v532_v16 }
  0x4f   :  { %463 = vmatprep.subr.bf16.mxu0 %v533_v19 }
  0x50   :  { %499 = vmatpush3.bf16.msra.mxu1 %v537_v21 }
  0x51   :  { %500 = vmatprep.subr.bf16.mxu1 %v292_v27 }
  0x52   :  { %464 = vmatpush3.bf16.msra.mxu0 %v535_v20 }
  0x53   :  { %465 = vmatprep.subr.bf16.mxu0 %v536_v22 }
  0x54   :  { %501 = vmatpush3.bf16.msra.mxu1 %v292_v27 }
  0x56   :  { %466 = vmatpush3.bf16.msra.mxu0 %v538_v28 }
  0x57   :  { %503 = vmatmul.mubr.msk.bf16.vlgmr.msra.gmra.mrb[0].mxu1 %vm280_vm2, %v544_v30 }
  0x59   :  { %327 = vmatmul.mubr.bf16.vlgmr.msra.gmra.mrb[0].mxu0 %v539_v29 }
  0x5a   :  { %334 = vmatprep.mubr.bf16.mxu0 %v545_v31 }
  0x61   :  { %335 = vmatmul.mubr.bf16.gmra.mrb[4].mxu0 %v547_v32 }
 0x12a   :  { %v504_v35 = vpop.f32.mrb[0].mxu1 }
 0x12b   :  { %v377_v39 = vpop.f32.mrb[1].mxu1 }
 0x12c   :  { %v467_v33 = vpop.f32.mrb[0].mxu0  ;;  %v505_v41 = vpop.f32.mrb[2].mxu1 }
 0x12d   :  { %v468_v34 = vpop.f32.mrb[1].mxu0  ;;  %v380_v44 = vpop.f32.mrb[3].mxu1 }
 0x12e   :  { %v469_v37 = vadd.f32 %v468_v34, %v467_v33  ;;  %v470_v38 = vpop.f32.mrb[2].mxu0 }
 0x12f   :  { %v471_v40 = vpop.f32.mrb[3].mxu0 }
 0x130   :  { %v472_v42 = vadd.f32 %v471_v40, %v470_v38  ;;  %v329_v43 = vadd.f32 %v469_v37, %v419_v36 }
 0x132   :  { %v378_v45 = vadd.f32 %v377_v39, %v329_v43  ;;  %v332_v46 = vadd.f32 %v472_v42, %v419_v36 }
 0x134   :  { %v392_v47 = vmax.f32 %v378_v45, 0.0  ;;  %v381_v48 = vadd.f32 %v380_v44, %v332_v46  ;;  %v473_v49 = vpop.f32.mrb[4].mxu0 }
 0x135   :  { %v474_v50 = vpop.f32.mrb[5].mxu0 }
 0x136   :  { %397 = vst.msk [vmem:[#allocation8] sm:$0xff] %vm396_vm3, %v392_v47  ;;  %v393_v51 = vmax.f32 %v381_v48, 0.0  ;;  %v475_v52 = vadd.f32 %v474_v50, %v473_v49  ;;  %v476_v53 = vpop.f32.mrb[6].mxu0 }
 0x137   :  { %v477_v54 = vpop.f32.mrb[7].mxu0 }
 0x138   :  { %398 = vst.msk [vmem:[#allocation8 + $0x8] sm:$0xff] %vm396_vm3, %v393_v51  ;;  %v337_v55 = vadd.f32 %v475_v52, %v419_v36  ;;  %v478_v56 = vadd.f32 %v477_v54, %v476_v53 }
 0x13a   :  { %v386_v57 = vadd.f32 %v504_v35, %v337_v55  ;;  %v340_v58 = vadd.f32 %v478_v56, %v419_v36 }
 0x13c   :  { %v394_v59 = vmax.f32 %v386_v57, 0.0  ;;  %v389_v60 = vadd.f32 %v505_v41, %v340_v58 }
 0x13e   :  { %399 = vst.msk [vmem:[#allocation8 + $0x10] sm:$0xff] %vm396_vm3, %v394_v59  ;;  %v395_v61 = vmax.f32 %v389_v60, 0.0 }
 0x140   :  { %400 = vst.msk [vmem:[#allocation8 + $0x18] sm:$0xff] %vm396_vm3, %v395_v61 }
 0x141   :  { %625 = shalt.err (!%p622_p0)
}
 0x142   :  { %s626_s28 = scalar_lea.hbm %s730_s3, 512 }
 0x143   :  { %p627_p1 = scmp.ne.s32.totalorder %s730_s3, %s626_s28  ;;  %p630_p2 = scmp.lt.u32.totalorder %s626_s28, %s730_s3 }
 0x145   :  { %p632_p3 = pnand %p630_p2, %p627_p1 }
 0x147   :  { %635 = shalt.err (!%p632_p3)
}
 0x148   :  { %s651_s6 = smov 128   ;;  %s652_s7 = smov 8  }
 0x149   :  { %412 = dma.vmem_to_hbm [thread:$0]  %s407_s24, 512, %s730_s3, [#allocation4], %s651_s6, %s651_s6, %s652_s7  }
 0x14a   :  { %640 = dma.done.wait [#allocation4], 512  }
 0x14b   :  { %641 = vsyncadd [#allocation4], 4294966784 }
 0x14c   :  { %416 = vsyncpa [#allocation3], 1 }
 0x14d   :  { %417 = vsyncpa [#allocation6], 1 }
 0x14e   :  { %418 = vsyncpa [#allocation4], 1 }

</bundles_post_ra>
